<compile_context>
chip_gen: v6e
topology: v6e:2x2x1
jax: 0.10.0
libtpu: 0.0.40
codegen_flags: <defaults>
</compile_context>

<pallas_src>
import jax
import jax.numpy as jnp
from jax import lax
from jax.experimental import pallas as pl
from jax.experimental.pallas import tpu as pltpu


# ----------------------------------------------------------------------------
# chip-aware budgets
# ----------------------------------------------------------------------------
def _tpu_vmem_capacity_bytes():
    try:
        info = pltpu.get_tpu_info()
        cap = getattr(info, "vmem_capacity_bytes", None)
        if cap:
            return int(cap)
    except Exception:
        pass
    return 128 * 1024 * 1024            # conservative default (v5e/v6e)


def _budget():
    cap = _tpu_vmem_capacity_bytes()
    # Leave headroom for compiler scratch.  v5e/v6e (128 MiB) -> 96 MiB,
    # v7x (64 MiB) -> 48 MiB.
    vmem_limit = min(96 * 1024 * 1024, (cap * 3) // 4)
    row_tile_target = 1024 if cap >= 100 * 1024 * 1024 else 256
    return vmem_limit, row_tile_target


def _pick_tile_m(M, target):
    """Largest row tile <= target dividing M; fail loudly instead of blowing VMEM."""
    if M <= target:
        return M
    for cand in (1024, 512, 256, 128, 64, 32, 16, 8):
        if cand <= target and M % cand == 0:
            return cand
    raise ValueError(
        f"batch*seq = {M} has no row-tile divisor <= {target}; pad the batch "
        "or sequence so the row-wise kernels can be tiled.")


def _cparams(sem, vmem_limit):
    return pltpu.CompilerParams(dimension_semantics=sem,
                                vmem_limit_bytes=int(vmem_limit))


# ----------------------------------------------------------------------------
# 1) Fused in-projection: x @ [Wz | W_xBC | Wdt] -> z, xBC (packed conv
#    stream), dt.  Lane-dense outputs, bf16 MXU operands, f32 accumulation.
# ----------------------------------------------------------------------------
def _in_proj_kernel(x_ref, wz_ref, wxbc_ref, wdt_ref,
                    bz_ref, bxbc_ref, bdt_ref,
                    oz_ref, oxbc_ref, odt_ref):
    xb = x_ref[...].astype(jnp.bfloat16)
    z = jnp.dot(xb, wz_ref[...], preferred_element_type=jnp.float32) + bz_ref[...]
    oz_ref[...] = z.astype(oz_ref.dtype)
    xbc = jnp.dot(xb, wxbc_ref[...], preferred_element_type=jnp.float32) + bxbc_ref[...]
    oxbc_ref[...] = xbc.astype(oxbc_ref.dtype)
    dt = jnp.dot(xb, wdt_ref[...], preferred_element_type=jnp.float32) + bdt_ref[...]
    odt_ref[...] = dt.astype(odt_ref.dtype)


def in_proj_split(x2, params, *, tile_m, vmem_limit):
    M, K = x2.shape
    assert M % tile_m == 0
    wz, wxbc, wdt = (params["in_proj_w_z"], params["in_proj_w_xbc"],
                     params["in_proj_w_dt"])
    bz, bxbc, bdt = (params["in_proj_b_z"], params["in_proj_b_xbc"],
                     params["in_proj_b_dt"])
    d_inner, d_xbc, d_dt = wz.shape[1], wxbc.shape[1], wdt.shape[1]
    in_specs = [
        pl.BlockSpec((tile_m, K), lambda i: (i, 0)),
        pl.BlockSpec(wz.shape, lambda i: (0, 0)),
        pl.BlockSpec(wxbc.shape, lambda i: (0, 0)),
        pl.BlockSpec(wdt.shape, lambda i: (0, 0)),
        pl.BlockSpec(bz.shape, lambda i: (0, 0)),
        pl.BlockSpec(bxbc.shape, lambda i: (0, 0)),
        pl.BlockSpec(bdt.shape, lambda i: (0, 0)),
    ]
    out_shape = (jax.ShapeDtypeStruct((M, d_inner), jnp.bfloat16),
                 jax.ShapeDtypeStruct((M, d_xbc), jnp.bfloat16),
                 jax.ShapeDtypeStruct((M, d_dt), jnp.float32))
    out_specs = (pl.BlockSpec((tile_m, d_inner), lambda i: (i, 0)),
                 pl.BlockSpec((tile_m, d_xbc), lambda i: (i, 0)),
                 pl.BlockSpec((tile_m, d_dt), lambda i: (i, 0)))
    return pl.pallas_call(
        _in_proj_kernel,
        out_shape=out_shape,
        grid_spec=pltpu.PrefetchScalarGridSpec(
            num_scalar_prefetch=0,
            grid=(M // tile_m,),
            in_specs=in_specs,
            out_specs=out_specs),
        compiler_params=_cparams(("parallel",), vmem_limit),
    )(x2, wz, wxbc, wdt, bz, bxbc, bdt)


# ----------------------------------------------------------------------------
# 2) Fused causal-conv1d + SiLU + chunked time-aware SSD.
#    grid = (batch, seq_chunks).  Conv halo + inter-chunk SSD state carried in
#    VMEM scratch; all MXU operands bf16; single lane-dense output store.
# ----------------------------------------------------------------------------
def _ssd_kernel(Q, H, P, N, d_conv, is_time):
    d_inner = H * P
    Dc = d_inner + 2 * N               # packed conv width  [x | B | C]
    KP = d_conv - 1
    PAD = ((KP + 7) // 8) * 8          # chunk rows start sublane-aligned
    HS = PAD - KP                      # halo start row

    def kernel(xbc_ref, dt_ref, td_ref,
               cw_ref, cb_ref,
               A_ref, dtb_ref, ts_ref, tb_ref, Drep_ref, E_ref,
               o_ref,
               win, state_ref, y_acc):
        c = pl.program_id(1)

        # ---- conv halo + state init / carry --------------------------------
        @pl.when(c == 0)
        def _():
            win[HS:PAD, :] = jnp.zeros((KP, Dc), jnp.float32)
            state_ref[...] = jnp.zeros_like(state_ref)

        @pl.when(c > 0)
        def _():
            # halo = last KP rows of the previous chunk (still in scratch)
            win[HS:PAD, :] = win[HS + Q:HS + Q + KP, :]

        win[PAD:PAD + Q, :] = xbc_ref[0].astype(jnp.float32)

        # ---- depthwise causal conv1d + SiLU over packed [x|B|C] ------------
        acc = win[HS:HS + Q, :] * cw_ref[0:1, :]
        for k in range(1, d_conv):                          # static, d_conv small
            acc = acc + win[HS + k:HS + k + Q, :] * cw_ref[k:k + 1, :]
        acc = acc + cb_ref[...]
        xbc = acc * jax.nn.sigmoid(acc)                     # (Q, Dc)  f32

        x = xbc[:, :d_inner]                                # (Q, d_inner)
        Bm = xbc[:, d_inner:d_inner + N]                    # (Q, N)
        Cm = xbc[:, d_inner + N:]                           # (Q, N)
        x_bf = x.astype(jnp.bfloat16)
        B_bf = Bm.astype(jnp.bfloat16)
        C_bf = Cm.astype(jnp.bfloat16)

        # ---- dt / log-decay ------------------------------------------------
        dt = jax.nn.softplus(dt_ref[0] + dtb_ref[...])      # (Q, H)
        if is_time:
            # TODO(synk): stand-in for TiSSD time-aware modulation.
            gate = jax.nn.sigmoid(td_ref[0] * ts_ref[...] + tb_ref[...])
            dt = dt * gate
        a = jnp.maximum(dt * A_ref[...], -60.0)             # (Q, H), A < 0

        row = lax.broadcasted_iota(jnp.int32, (Q, Q), 0)
        col = lax.broadcasted_iota(jnp.int32, (Q, Q), 1)
        causal = row >= col
        tri = causal.astype(jnp.float32)
        # inclusive within-chunk cumsum (tiny f32 matmul: Q x Q x H)
        cum = jnp.dot(tri, a, preferred_element_type=jnp.float32)     # (Q, H)

        exp_cum = jnp.exp(cum)                               # (Q, H)
        w = dt * jnp.exp(cum[Q - 1:Q, :] - cum)              # (Q, H), in (0, 1]
        # lane-dense per-head -> per-channel expansions via tiny matmul with E
        exp_cum_rep = jnp.dot(exp_cum, E_ref[...],
                              preferred_element_type=jnp.float32)     # (Q, d_inner)
        w_rep = jnp.dot(w, E_ref[...],
                        preferred_element_type=jnp.float32)           # (Q, d_inner)
        alast_rep = exp_cum_rep[Q - 1:Q, :]                  # (1, d_inner)

        st = state_ref[...]                                  # (N, d_inner) f32

        # ---- hoisted lane-dense matmuls (bf16 MXU, f32 accumulate) ---------
        cb = lax.dot_general(C_bf, B_bf, (((1,), (1,)), ((), ())),
                             preferred_element_type=jnp.float32)       # (Q, Q)
        y_state = jnp.dot(C_bf, st.astype(jnp.bfloat16),
                          preferred_element_type=jnp.float32)          # (Q, d_inner)
        d_state_upd = lax.dot_general(
            B_bf, (x * w_rep).astype(jnp.bfloat16),
            (((0,), (0,)), ((), ())),
            preferred_element_type=jnp.float32)                        # (N, d_inner)

        # one small (Q,H) transpose per chunk (not per head)
        cum_t = cum.T                                        # (H, Q)
        dt_t = dt.T                                          # (H, Q)

        # ---- per-head intra-chunk quadratic term -> lane-dense scratch -----
        for h in range(H):
            diff = cum[:, h:h + 1] - cum_t[h:h + 1, :]       # (Q, Q)
            decay = jnp.exp(jnp.where(causal, diff, -1e30))  # mask BEFORE exp
            smat = (cb * (decay * dt_t[h:h + 1, :])).astype(jnp.bfloat16)
            y_acc[:, h * P:(h + 1) * P] = jnp.dot(
                smat, x_bf[:, h * P:(h + 1) * P],
                preferred_element_type=jnp.float32)

        # ---- combine + single full-width output store -----------------------
        y = y_acc[...] + exp_cum_rep * y_state + Drep_ref[...] * x
        o_ref[0, :, :] = y.astype(o_ref.dtype)

        # ---- state update (single full-width write) --------------------------
        state_ref[...] = alast_rep * st + d_state_upd

    return kernel


def ssd_fused(xbc, dt_raw, td, params, cfg, *, vmem_limit):
    Bsz, L, Dc = xbc.shape
    N = cfg["d_state"]
    P = cfg["head_dim"]
    d_inner = cfg["expand"] * cfg["d_model"]
    assert Dc == d_inner + 2 * N
    assert d_inner % P == 0
    H = d_inner // P
    d_conv = cfg["d_conv"]
    Q = min(cfg["chunk_size"], L)
    assert L % Q == 0, "seq_len must be a multiple of chunk_size"
    assert Q > d_conv - 1
    n_chunks = L // Q
    KP = d_conv - 1
    PAD = ((KP + 7) // 8) * 8

    in_specs = [
        pl.BlockSpec((1, Q, Dc), lambda b, c: (b, c, 0)),      # packed x|B|C
        pl.BlockSpec((1, Q, H), lambda b, c: (b, c, 0)),       # dt raw
        pl.BlockSpec((1, Q, 1), lambda b, c: (b, c, 0)),       # time diff
        pl.BlockSpec((d_conv, Dc), lambda b, c: (0, 0)),       # conv weight
        pl.BlockSpec((1, Dc), lambda b, c: (0, 0)),            # conv bias
        pl.BlockSpec((1, H), lambda b, c: (0, 0)),             # A
        pl.BlockSpec((1, H), lambda b, c: (0, 0)),             # dt_bias
        pl.BlockSpec((1, H), lambda b, c: (0, 0)),             # time_scale
        pl.BlockSpec((1, H), lambda b, c: (0, 0)),             # time_bias
        pl.BlockSpec((1, d_inner), lambda b, c: (0, 0)),       # D (repeated)
        pl.BlockSpec((H, d_inner), lambda b, c: (0, 0)),       # head-expand E
    ]
    scratch = [
        pltpu.VMEM((PAD + Q, Dc), jnp.float32),    # conv window (halo carry)
        pltpu.VMEM((N, d_inner), jnp.float32),     # inter-chunk SSD state
        pltpu.VMEM((Q, d_inner), jnp.float32),     # per-chunk y accumulator
    ]
    return pl.pallas_call(
        _ssd_kernel(Q, H, P, N, d_conv, cfg["is_time"]),
        out_shape=jax.ShapeDtypeStruct((Bsz, L, d_inner), jnp.bfloat16),
        grid_spec=pltpu.PrefetchScalarGridSpec(
            num_scalar_prefetch=0,
            grid=(Bsz, n_chunks),
            in_specs=in_specs,
            out_specs=pl.BlockSpec((1, Q, d_inner), lambda b, c: (b, c, 0)),
            scratch_shapes=scratch),
        compiler_params=_cparams(("parallel", "arbitrary"), vmem_limit),
    )(xbc, dt_raw, td,
      params["conv_w"], params["conv_b"],
      params["A"], params["dt_bias"], params["time_scale"], params["time_bias"],
      params["D_rep"], params["head_expand"])


# ----------------------------------------------------------------------------
# 3) Fused gated-RMSNorm + out_proj + (residual) + LayerNorm
# ----------------------------------------------------------------------------
def _rms_outproj_ln_kernel(eps, has_residual):
    def kernel(*refs):
        if has_residual:
            (y_ref, z_ref, res_ref, rmsw_ref, w_ref, b_ref,
             ln_g_ref, ln_b_ref, o_ref) = refs
        else:
            (y_ref, z_ref, rmsw_ref, w_ref, b_ref,
             ln_g_ref, ln_b_ref, o_ref) = refs
            res_ref = None
        y = y_ref[...].astype(jnp.float32)
        z = z_ref[...].astype(jnp.float32)
        g = y * (z * jax.nn.sigmoid(z))                     # SiLU gate
        ms = jnp.mean(g * g, axis=-1, keepdims=True)
        g = g * lax.rsqrt(ms + eps) * rmsw_ref[...]
        o = jnp.dot(g.astype(jnp.bfloat16), w_ref[...],
                    preferred_element_type=jnp.float32) + b_ref[...]
        if has_residual:
            o = o + res_ref[...].astype(jnp.float32)
        mu = jnp.mean(o, axis=-1, keepdims=True)
        oc = o - mu
        var = jnp.mean(oc * oc, axis=-1, keepdims=True)
        o_ref[...] = (oc * lax.rsqrt(var + eps) * ln_g_ref[...]
                      + ln_b_ref[...]).astype(o_ref.dtype)
    return kernel


def rms_outproj_ln(y, z, residual, params, eps, *, tile_m, vmem_limit,
                   out_dtype=jnp.float32):
    M, d_inner = y.shape
    d_model = params["out_proj_w"].shape[1]
    assert M % tile_m == 0
    has_res = residual is not None
    inputs = [y, z] + ([residual] if has_res else []) + [
        params["rms_w"], params["out_proj_w"], params["out_proj_b"],
        params["ln_g"], params["ln_b"]]
    in_specs = [pl.BlockSpec((tile_m, d_inner), lambda i: (i, 0)),
                pl.BlockSpec((tile_m, d_inner), lambda i: (i, 0))]
    if has_res:
        in_specs.append(pl.BlockSpec((tile_m, d_model), lambda i: (i, 0)))
    in_specs += [
        pl.BlockSpec((1, d_inner), lambda i: (0, 0)),
        pl.BlockSpec((d_inner, d_model), lambda i: (0, 0)),
        pl.BlockSpec((1, d_model), lambda i: (0, 0)),
        pl.BlockSpec((1, d_model), lambda i: (0, 0)),
        pl.BlockSpec((1, d_model), lambda i: (0, 0)),
    ]
    return pl.pallas_call(
        _rms_outproj_ln_kernel(eps, has_res),
        out_shape=jax.ShapeDtypeStruct((M, d_model), out_dtype),
        grid_spec=pltpu.PrefetchScalarGridSpec(
            num_scalar_prefetch=0,
            grid=(M // tile_m,),
            in_specs=in_specs,
            out_specs=pl.BlockSpec((tile_m, d_model), lambda i: (i, 0))),
        compiler_params=_cparams(("parallel",), vmem_limit),
    )(*inputs)


# ----------------------------------------------------------------------------
# 4) Fused FeedForward: LN(fc2(hardswish(fc1(h))) + h)
# ----------------------------------------------------------------------------
def _ffn_kernel(eps):
    def kernel(h_ref, w1_ref, b1_ref, w2_ref, b2_ref, g_ref, be_ref, o_ref):
        h = h_ref[...].astype(jnp.float32)
        a1 = jnp.dot(h.astype(jnp.bfloat16), w1_ref[...],
                     preferred_element_type=jnp.float32) + b1_ref[...]
        a1 = a1 * jnp.clip(a1 + 3.0, 0.0, 6.0) * (1.0 / 6.0)   # hardswish
        a2 = jnp.dot(a1.astype(jnp.bfloat16), w2_ref[...],
                     preferred_element_type=jnp.float32) + b2_ref[...]
        x = a2 + h
        mu = jnp.mean(x, axis=-1, keepdims=True)
        xc = x - mu
        var = jnp.mean(xc * xc, axis=-1, keepdims=True)
        o_ref[...] = (xc * lax.rsqrt(var + eps) * g_ref[...]
                      + be_ref[...]).astype(o_ref.dtype)
    return kernel


def ffn_fused(hidden, params, eps, *, tile_m, vmem_limit):
    M, D = hidden.shape
    inner = params["fc1_w"].shape[1]
    assert M % tile_m == 0
    return pl.pallas_call(
        _ffn_kernel(eps),
        out_shape=jax.ShapeDtypeStruct((M, D), jnp.float32),
        grid_spec=pltpu.PrefetchScalarGridSpec(
            num_scalar_prefetch=0,
            grid=(M // tile_m,),
            in_specs=[
                pl.BlockSpec((tile_m, D), lambda i: (i, 0)),
                pl.BlockSpec((D, inner), lambda i: (0, 0)),
                pl.BlockSpec((1, inner), lambda i: (0, 0)),
                pl.BlockSpec((inner, D), lambda i: (0, 0)),
                pl.BlockSpec((1, D), lambda i: (0, 0)),
                pl.BlockSpec((1, D), lambda i: (0, 0)),
                pl.BlockSpec((1, D), lambda i: (0, 0)),
            ],
            out_specs=pl.BlockSpec((tile_m, D), lambda i: (i, 0))),
        compiler_params=_cparams(("parallel",), vmem_limit),
    )(hidden, params["fc1_w"], params["fc1_b"], params["fc2_w"],
      params["fc2_b"], params["ffn_ln_g"], params["ffn_ln_b"])


# ----------------------------------------------------------------------------
# Parameter init (deterministic, synthetic).  MXU weights stored in bf16.
# ----------------------------------------------------------------------------
def init_params(key, cfg):
    d_model, d_state, d_conv = cfg["d_model"], cfg["d_state"], cfg["d_conv"]
    d_inner = cfg["expand"] * d_model
    P = cfg["head_dim"]
    H = d_inner // P
    Dc = d_inner + 2 * d_state
    ks = jax.random.split(key, 8)

    def w(k, shape, scale=0.02):
        return (scale * jax.random.normal(k, shape, jnp.float32)).astype(jnp.bfloat16)

    return dict(
        # in_proj split into z | packed-xBC (one conv stream) | dt
        in_proj_w_z=w(ks[0], (d_model, d_inner)),
        in_proj_w_xbc=w(ks[1], (d_model, Dc)),
        in_proj_w_dt=w(ks[2], (d_model, H)),
        in_proj_b_z=jnp.zeros((1, d_inner), jnp.float32),
        in_proj_b_xbc=jnp.zeros((1, Dc), jnp.float32),
        in_proj_b_dt=jnp.zeros((1, H), jnp.float32),
        # depthwise conv over packed [x | B | C]
        conv_w=0.1 * jax.random.normal(ks[3], (d_conv, Dc), jnp.float32),
        conv_b=jnp.zeros((1, Dc), jnp.float32),
        dt_bias=jnp.log(jnp.expm1(jnp.linspace(0.01, 0.1, H))
                        ).reshape(1, H).astype(jnp.float32),
        A=(-jnp.arange(1, H + 1, dtype=jnp.float32)).reshape(1, H),
        D_rep=jnp.ones((1, d_inner), jnp.float32),
        time_scale=0.1 * jnp.ones((1, H), jnp.float32),
        time_bias=jnp.zeros((1, H), jnp.float32),
        # per-head -> per-channel expansion matrix (lane-dense expansion matmul)
        head_expand=jnp.repeat(jnp.eye(H, dtype=jnp.float32), P, axis=1),
        rms_w=jnp.ones((1, d_inner), jnp.float32),
        out_proj_w=w(ks[4], (d_inner, d_model)),
        out_proj_b=jnp.zeros((1, d_model), jnp.float32),
        ln_g=jnp.ones((1, d_model), jnp.float32),
        ln_b=jnp.zeros((1, d_model), jnp.float32),
        fc1_w=w(ks[5], (d_model, 4 * d_model)),
        fc1_b=jnp.zeros((1, 4 * d_model), jnp.float32),
        fc2_w=w(ks[6], (4 * d_model, d_model)),
        fc2_b=jnp.zeros((1, d_model), jnp.float32),
        ffn_ln_g=jnp.ones((1, d_model), jnp.float32),
        ffn_ln_b=jnp.zeros((1, d_model), jnp.float32),
    )


# ----------------------------------------------------------------------------
# TiSSDLayer forward
# ----------------------------------------------------------------------------
def tissd_layer_forward(params, cfg, x, time_diff):
    Bsz, L, D = x.shape
    eps = cfg["norm_eps"]
    d_inner = cfg["expand"] * D
    N = cfg["d_state"]
    H = d_inner // cfg["head_dim"]
    M = Bsz * L
    vmem_limit, row_tile_target = _budget()
    tile_m = _pick_tile_m(M, row_tile_target)

    x2 = x.reshape(M, D).astype(jnp.float32)

    # ---- 1) fused in-projection -> z, packed xBC, dt
    z, xbc, dt_raw = in_proj_split(x2.astype(jnp.bfloat16), params,
                                   tile_m=tile_m, vmem_limit=vmem_limit)

    # ---- 2) fused causal-conv + SiLU + chunked time-aware SSD
    y = ssd_fused(xbc.reshape(Bsz, L, d_inner + 2 * N),
                  dt_raw.reshape(Bsz, L, H),
                  time_diff.reshape(Bsz, L, 1).astype(jnp.float32),
                  params, cfg, vmem_limit=vmem_limit)

    # ---- 3) fused gated-RMSNorm + out_proj + (residual) + LayerNorm
    #      (dropout = identity in eval mode)
    residual = None if cfg["num_layers"] == 1 else x2
    hid_dtype = jnp.bfloat16 if cfg["is_ffn"] else jnp.float32
    hidden = rms_outproj_ln(y.reshape(M, d_inner), z, residual, params, eps,
                            tile_m=tile_m, vmem_limit=vmem_limit,
                            out_dtype=hid_dtype)

    # ---- 4) fused FeedForward: LN(fc2(hardswish(fc1(h))) + h)
    if cfg["is_ffn"]:
        hidden = ffn_fused(hidden, params, eps, tile_m=tile_m,
                           vmem_limit=vmem_limit)

    return hidden.reshape(Bsz, L, D).astype(jnp.float32), time_diff


# ----------------------------------------------------------------------------
if __name__ == "__main__":
    cfg = dict(d_model=32, seq_len=8, d_state=16, d_conv=4, expand=2,
               num_layers=2, head_dim=16, chunk_size=8, dropout=0.2,
               time_drop_out=0.1, is_ffn=True, is_time=True,
               p2p_residual=False, norm_eps=1e-12)
    # TODO(synk): p2p_residual behaviour of TiSSD internals is not public.

    key = jax.random.PRNGKey(0)
    kx, kt, kp = jax.random.split(key, 3)
    B, L, D = 2, cfg["seq_len"], cfg["d_model"]
    x = jax.random.normal(kx, (B, L, D), jnp.float32)
    time_diff = jnp.abs(jax.random.normal(kt, (B, L), jnp.float32))
    params = init_params(kp, cfg)

    out, td_out = tissd_layer_forward(params, cfg, x, time_diff)
    jax.block_until_ready(out)
    assert out.shape == (B, L, D)
    assert td_out.shape == (B, L)
    assert bool(jnp.all(jnp.isfinite(out)))
    print("KERNEL_OK")
</pallas_src>

<mosaic_0001>
module attributes {stable_mosaic.version = 11 : i64} {
  func.func @_in_proj_kernel(%arg0: i32, %arg1: memref<16x32xbf16, #tpu.memory_space<vmem>>, %arg2: memref<32x64xbf16, #tpu.memory_space<vmem>>, %arg3: memref<32x96xbf16, #tpu.memory_space<vmem>>, %arg4: memref<32x4xbf16, #tpu.memory_space<vmem>>, %arg5: memref<1x64xf32, #tpu.memory_space<vmem>>, %arg6: memref<1x96xf32, #tpu.memory_space<vmem>>, %arg7: memref<1x4xf32, #tpu.memory_space<vmem>>, %arg8: memref<16x64xbf16, #tpu.memory_space<vmem>>, %arg9: memref<16x96xbf16, #tpu.memory_space<vmem>>, %arg10: memref<16x4xf32, #tpu.memory_space<vmem>>) attributes {dimension_semantics = [#tpu.dimension_semantics<parallel>], iteration_bounds = array<i64: 1>, scalar_prefetch = 0 : i64, scratch_operands = 0 : i64, tpu.core_type = #tpu.core_type<tc>, window_params = [{transform_indices = @transform_0, window_bounds = array<i64: 16, 32>}, {pipeline_mode = #tpu.pipeline_mode<synchronous>, transform_indices = @transform_1, window_bounds = array<i64: 32, 64>}, {pipeline_mode = #tpu.pipeline_mode<synchronous>, transform_indices = @transform_2, window_bounds = array<i64: 32, 96>}, {pipeline_mode = #tpu.pipeline_mode<synchronous>, transform_indices = @transform_3, window_bounds = array<i64: 32, 4>}, {pipeline_mode = #tpu.pipeline_mode<synchronous>, transform_indices = @transform_4, window_bounds = array<i64: 1, 64>}, {pipeline_mode = #tpu.pipeline_mode<synchronous>, transform_indices = @transform_5, window_bounds = array<i64: 1, 96>}, {pipeline_mode = #tpu.pipeline_mode<synchronous>, transform_indices = @transform_6, window_bounds = array<i64: 1, 4>}, {transform_indices = @transform_7, window_bounds = array<i64: 16, 64>}, {transform_indices = @transform_8, window_bounds = array<i64: 16, 96>}, {transform_indices = @transform_9, window_bounds = array<i64: 16, 4>}]} {
    %c0 = arith.constant 0 : index
    %c0_0 = arith.constant 0 : index
    %0 = vector.load %arg1[%c0, %c0_0] : memref<16x32xbf16, #tpu.memory_space<vmem>>, vector<16x32xbf16>
    %c0_1 = arith.constant 0 : index
    %c0_2 = arith.constant 0 : index
    %1 = vector.load %arg2[%c0_1, %c0_2] : memref<32x64xbf16, #tpu.memory_space<vmem>>, vector<32x64xbf16>
    %cst = arith.constant dense<0.000000e+00> : vector<16x64xf32>
    %2 = tpu.matmul %0, %1, %cst {dimension_numbers = #tpu.dot_dimension_numbers<[1], [0], [0], [1], [0, 0, 1, 1], [], []>} : vector<16x32xbf16>, vector<32x64xbf16>, vector<16x64xf32> -> vector<16x64xf32>
    %c0_3 = arith.constant 0 : index
    %c0_4 = arith.constant 0 : index
    %3 = vector.load %arg5[%c0_3, %c0_4] : memref<1x64xf32, #tpu.memory_space<vmem>>, vector<1x64xf32>
    %4 = vector.broadcast %3 : vector<1x64xf32> to vector<16x64xf32>
    %5 = arith.addf %2, %4 : vector<16x64xf32>
    %6 = arith.truncf %5 : vector<16x64xf32> to vector<16x64xbf16>
    %c0_5 = arith.constant 0 : index
    %c0_6 = arith.constant 0 : index
    %7 = vector.load %arg8[%c0_5, %c0_6] : memref<16x64xbf16, #tpu.memory_space<vmem>>, vector<16x64xbf16>
    tpu.vector_store %arg8[%c0_5, %c0_6], %6 {strides = array<i32>} : memref<16x64xbf16, #tpu.memory_space<vmem>>, vector<16x64xbf16>,
    %c0_7 = arith.constant 0 : index
    %c0_8 = arith.constant 0 : index
    %8 = vector.load %arg3[%c0_7, %c0_8] : memref<32x96xbf16, #tpu.memory_space<vmem>>, vector<32x96xbf16>
    %cst_9 = arith.constant dense<0.000000e+00> : vector<16x96xf32>
    %9 = tpu.matmul %0, %8, %cst_9 {dimension_numbers = #tpu.dot_dimension_numbers<[1], [0], [0], [1], [0, 0, 1, 1], [], []>} : vector<16x32xbf16>, vector<32x96xbf16>, vector<16x96xf32> -> vector<16x96xf32>
    %c0_10 = arith.constant 0 : index
    %c0_11 = arith.constant 0 : index
    %10 = vector.load %arg6[%c0_10, %c0_11] : memref<1x96xf32, #tpu.memory_space<vmem>>, vector<1x96xf32>
    %11 = vector.broadcast %10 : vector<1x96xf32> to vector<16x96xf32>
    %12 = arith.addf %9, %11 : vector<16x96xf32>
    %13 = arith.truncf %12 : vector<16x96xf32> to vector<16x96xbf16>
    %c0_12 = arith.constant 0 : index
    %c0_13 = arith.constant 0 : index
    %14 = vector.load %arg9[%c0_12, %c0_13] : memref<16x96xbf16, #tpu.memory_space<vmem>>, vector<16x96xbf16>
    tpu.vector_store %arg9[%c0_12, %c0_13], %13 {strides = array<i32>} : memref<16x96xbf16, #tpu.memory_space<vmem>>, vector<16x96xbf16>,
    %c0_14 = arith.constant 0 : index
    %c0_15 = arith.constant 0 : index
    %15 = vector.load %arg4[%c0_14, %c0_15] : memref<32x4xbf16, #tpu.memory_space<vmem>>, vector<32x4xbf16>
    %cst_16 = arith.constant dense<0.000000e+00> : vector<16x4xf32>
    %16 = tpu.matmul %0, %15, %cst_16 {dimension_numbers = #tpu.dot_dimension_numbers<[1], [0], [0], [1], [0, 0, 1, 1], [], []>} : vector<16x32xbf16>, vector<32x4xbf16>, vector<16x4xf32> -> vector<16x4xf32>
    %c0_17 = arith.constant 0 : index
    %c0_18 = arith.constant 0 : index
    %17 = vector.load %arg7[%c0_17, %c0_18] : memref<1x4xf32, #tpu.memory_space<vmem>>, vector<1x4xf32>
    %18 = vector.broadcast %17 : vector<1x4xf32> to vector<16x4xf32>
    %19 = arith.addf %16, %18 : vector<16x4xf32>
    %c0_19 = arith.constant 0 : index
    %c0_20 = arith.constant 0 : index
    %20 = vector.load %arg10[%c0_19, %c0_20] : memref<16x4xf32, #tpu.memory_space<vmem>>, vector<16x4xf32>
    tpu.vector_store %arg10[%c0_19, %c0_20], %19 {strides = array<i32>} : memref<16x4xf32, #tpu.memory_space<vmem>>, vector<16x4xf32>,
    return
  }
  func.func @transform_0(%arg0: i32) -> (i32, i32) {
    %c0_i32 = arith.constant 0 : i32
    %c0_i32_0 = arith.constant 0 : i32
    return %arg0, %c0_i32 : i32, i32
  }
  func.func @transform_1(%arg0: i32) -> (i32, i32) {
    %c0_i32 = arith.constant 0 : i32
    %c0_i32_0 = arith.constant 0 : i32
    %c0_i32_1 = arith.constant 0 : i32
    return %c0_i32, %c0_i32_0 : i32, i32
  }
  func.func @transform_2(%arg0: i32) -> (i32, i32) {
    %c0_i32 = arith.constant 0 : i32
    %c0_i32_0 = arith.constant 0 : i32
    %c0_i32_1 = arith.constant 0 : i32
    return %c0_i32, %c0_i32_0 : i32, i32
  }
  func.func @transform_3(%arg0: i32) -> (i32, i32) {
    %c0_i32 = arith.constant 0 : i32
    %c0_i32_0 = arith.constant 0 : i32
    %c0_i32_1 = arith.constant 0 : i32
    return %c0_i32, %c0_i32_0 : i32, i32
  }
  func.func @transform_4(%arg0: i32) -> (i32, i32) {
    %c0_i32 = arith.constant 0 : i32
    %c0_i32_0 = arith.constant 0 : i32
    %c0_i32_1 = arith.constant 0 : i32
    return %c0_i32, %c0_i32_0 : i32, i32
  }
  func.func @transform_5(%arg0: i32) -> (i32, i32) {
    %c0_i32 = arith.constant 0 : i32
    %c0_i32_0 = arith.constant 0 : i32
    %c0_i32_1 = arith.constant 0 : i32
    return %c0_i32, %c0_i32_0 : i32, i32
  }
  func.func @transform_6(%arg0: i32) -> (i32, i32) {
    %c0_i32 = arith.constant 0 : i32
    %c0_i32_0 = arith.constant 0 : i32
    %c0_i32_1 = arith.constant 0 : i32
    return %c0_i32, %c0_i32_0 : i32, i32
  }
  func.func @transform_7(%arg0: i32) -> (i32, i32) {
    %c0_i32 = arith.constant 0 : i32
    %c0_i32_0 = arith.constant 0 : i32
    return %arg0, %c0_i32 : i32, i32
  }
  func.func @transform_8(%arg0: i32) -> (i32, i32) {
    %c0_i32 = arith.constant 0 : i32
    %c0_i32_0 = arith.constant 0 : i32
    return %arg0, %c0_i32 : i32, i32
  }
  func.func @transform_9(%arg0: i32) -> (i32, i32) {
    %c0_i32 = arith.constant 0 : i32
    %c0_i32_0 = arith.constant 0 : i32
    return %arg0, %c0_i32 : i32, i32
  }
}

</mosaic_0001>

<bundles_post_ra>
// kernel: tpu_custom_call.1
= control target key start
LH: loop header
LB: loop body
LE: loop exit
PB: predicated region body
PF: predicated region fallthrough
CT: control target
= control target key end

     0   :  { %15 = vsyncpa [#allocation3], 0  ;;  %s601_s0 = inlined_call_operand.hbm [shape: bf16[16,32], index: 0, kind: input, shape index: {}]   ;;  %s602_s1 = inlined_call_operand.vmem [shape: bf16[32,64], index: 1, kind: input, shape index: {}]   ;;  %s603_s2 = inlined_call_operand.hbm [shape: bf16[32,96], index: 2, kind: input, shape index: {}]   ;;  %s604_s3 = inlined_call_operand.vmem [shape: bf16[32,4], index: 3, kind: input, shape index: {}]   ;;  %s605_s4 = inlined_call_operand.vmem [shape: f32[1,64], index: 4, kind: input, shape index: {}]   ;;  %s606_s5 = inlined_call_operand.vmem [shape: f32[1,96], index: 5, kind: input, shape index: {}]   ;;  %s607_s6 = inlined_call_operand.vmem [shape: f32[1,4], index: 6, kind: input, shape index: {}]   ;;  %s608_s7 = inlined_call_operand.hbm [shape: bf16[16,64], index: 7, kind: output, shape index: {0}]   ;;  %s609_s8 = inlined_call_operand.hbm [shape: bf16[16,96], index: 8, kind: output, shape index: {1}]   ;;  %s610_s9 = inlined_call_operand.vmem [shape: f32[16,4], index: 9, kind: output, shape index: {2}]  }
   0x1   :  { %16 = vsyncpa [#allocation6], 0 }
   0x2   :  { %17 = vsyncpa [#allocation4], 0 }
   0x3   :  { %18 = vsyncpa [#allocation9], 0  ;;  %s483_s30 = smov [#allocation2]  }
   0x4   :  { %s24_s10 = sshll.u32 %s483_s30, 4  ;;  %s25_s10 = int_to_ptr.vmem [resolvable:$true] %s24_s10 }
   0x5   :  { %s403_s11 = scalar_lea.vmem %s25_s10, 128  ;;  %p408_p1 = scmp.lt.s32.totalorder %s25_s10, %s25_s10 }
   0x6   :  { %p404_p0 = scmp.ne.s32.totalorder %s25_s10, %s403_s11  ;;  %p409_p2 = scmp.lt.s32.totalorder %s403_s11, %s403_s11 }
   0x8   :  { %p410_p3 = por %p409_p2, %p408_p1 }
   0xa   :  { %p411_p4 = pnand %p410_p3, %p404_p0 }
   0xc   :  { %414 = shalt.err (!%p411_p4)
}
   0xd   :  { %s484_s12 = smov 64   ;;  %s485_s13 = smov 4  }
   0xe   :  { %30 = dma.hbm_to_vmem [thread:$0]  %s601_s0, 128, %s25_s10, [#allocation3], %s484_s12, %s484_s12, %s485_s13  }
   0xf   :  { %s486_s16 = smov [#allocation5]  }
  0x10   :  { %s38_s17 = sshll.u32 %s486_s16, 4  ;;  %s39_s17 = int_to_ptr.vmem [resolvable:$true] %s38_s17 }
  0x11   :  { %s423_s18 = scalar_lea.vmem %s39_s17, 256  ;;  %p428_p6 = scmp.lt.s32.totalorder %s39_s17, %s39_s17 }
  0x12   :  { %p424_p5 = scmp.ne.s32.totalorder %s39_s17, %s423_s18  ;;  %p429_p7 = scmp.lt.s32.totalorder %s423_s18, %s423_s18 }
  0x14   :  { %p430_p8 = por %p429_p7, %p428_p6 }
  0x16   :  { %p431_p9 = pnand %p430_p8, %p424_p5 }
  0x18   :  { %434 = shalt.err (!%p431_p9)
}
  0x19   :  { %44 = dma.hbm_to_vmem [thread:$0]  %s603_s2, 256, %s39_s17, [#allocation6], %s484_s12, %s484_s12, %s485_s13  }
  0x1a   :  { %475 = dma.done.wait [#allocation3], 128  }
  0x1b   :  { %476 = vsyncadd [#allocation3], 4294967168 }
  0x1c   :  { %477 = dma.done.wait [#allocation6], 256  }
  0x1d   :  { %478 = vsyncadd [#allocation6], 4294967040  ;;  %v487_v0 = vmov 0.0   ;;  %vm488_vm0 = vmmov 0   ;;  %v388_v1 = vld [vmem:[%s602_s1 + $0x8] sm:$0xff]   ;;  %v389_v2 = vld [vmem:[#allocation5 + $0x8] sm:$0xff]  }
  0x1e   :  { %356 = vmatprep.subr.bf16.mxu0 %v487_v0  ;;  %364 = vmatprep.subr.bf16.mxu1 %v487_v0  ;;  %v390_v3 = vld [vmem:[%s602_s1] sm:$0xff]   ;;  %v391_v4 = vld [vmem:[#allocation5] sm:$0xff]   ;;  %vm90_vm1 = vcmask 261120   ;;  %vm143_vm2 = vcmask 519168   ;;  %vm218_vm3 = vcmask 781312   ;;  %vm285_vm4 = vcmask 31744  }
  0x1f   :  { %360 = vmatprep.mubr.msk.bf16.mxu0 %vm488_vm0, %v487_v0  ;;  %368 = vmatprep.mubr.msk.bf16.mxu1 %vm488_vm0, %v487_v0  ;;  %v392_v5 = vld [vmem:[#allocation2] sm:$0xff]   ;;  %v393_v6 = vld [vmem:[%s604_s3 + $0x8] sm:$0xff]  }
  0x20   :  { %357 = vmatpush3.bf16.msra.mxu0 %v388_v1  ;;  %365 = vmatpush3.bf16.msra.mxu1 %v389_v2  ;;  %v394_v7 = vld [vmem:[%s604_s3] sm:$0xff]   ;;  %s489_s3 = smov [#allocation7]  }
  0x21   :  { %358 = vmatprep.subr.bf16.mxu0 %v487_v0  ;;  %366 = vmatprep.subr.bf16.mxu1 %v487_v0  ;;  %v326_v8 = vld [vmem:[%s605_s4] ss:$0 sm:$0xff]  ;;  %s293_s30 = sshll.u32 %s489_s3, 4  ;;  %s490_s4 = smov [#allocation8]   ;;  %s294_s30 = int_to_ptr.vmem [resolvable:$true] %s293_s30 }
  0x22   :  { %v333_v9 = vld [vmem:[%s606_s5] ss:$0 sm:$0xff]  ;;  %s305_s10 = sshll.u32 %s490_s4, 4  ;;  %s435_s14 = scalar_lea.vmem %s294_s30, 128  ;;  %s306_s10 = int_to_ptr.vmem [resolvable:$true] %s305_s10 }
  0x23   :  { %v339_v23 = vld [vmem:[%s607_s6] ss:$0 sm:$0xff]  ;;  %p436_p10 = scmp.ne.s32.totalorder %s294_s30, %s435_s14  ;;  %p440_p11 = scmp.lt.s32.totalorder %s294_s30, %s294_s30 }
  0x24   :  { %359 = vmatpush3.bf16.msra.mxu0 %v390_v3  ;;  %367 = vmatpush3.bf16.msra.mxu1 %v391_v4  ;;  %p441_p12 = scmp.lt.s32.totalorder %s435_s14, %s435_s14 }
  0x25   :  { %372 = vmatprep.subr.bf16.mxu0 %v487_v0 }
  0x26   :  { %p442_p13 = por %p441_p12, %p440_p11 }
  0x27   :  { %361 = vmatmul.mubr.msk.bf16.vlgmr.msra.gmra.mxu0 %vm90_vm1, %v392_v5  ;;  %369 = vmatmul.mubr.msk.bf16.vlgmr.msra.gmra.mxu1 %vm90_vm1, %v392_v5 }
  0x28   :  { %373 = vmatpush3.bf16.msra.mxu0 %v393_v6  ;;  %376 = vmatprep.mubr.msk.bf16.mxu0 %vm488_vm0, %v487_v0  ;;  %p443_p0 = pnand %p442_p13, %p436_p10 }
  0x29   :  { %374 = vmatprep.subr.bf16.mxu0 %v487_v0 }
  0x2c   :  { %375 = vmatpush3.bf16.msra.mxu0 %v394_v7 }
  0x2f   :  { %377 = vmatmul.mubr.msk.bf16.vlgmr.msra.gmra.mxu0 %vm90_vm1, %v392_v5 }
  0xe7   :  { %v128_v10 = vpop.f32.mrf.mxu0  ;;  %v203_v12 = vpop.f32.mrf.mxu1 }
  0xe8   :  { %v129_v11 = vadd.f32 %v326_v8, %v128_v10  ;;  %v204_v13 = vadd.f32 %v333_v9, %v203_v12 }
  0xe9   :  { %v362_v14 = vpop.f32.mrf.mxu0  ;;  %v370_v16 = vpop.f32.mrf.mxu1 }
  0xea   :  { %v343_v15 = vpack.c.bf16 %v129_v11, %v129_v11  ;;  %v345_v17 = vpack.c.bf16 %v204_v13, %v204_v13 }
  0xeb   :  { %v131_v18 = vpop.f32.mrf.mxu0  ;;  %v206_v20 = vpop.f32.mrf.mxu1 }
  0xec   :  { %v132_v19 = vadd.f32 %v326_v8, %v131_v18  ;;  %144 = vst.msk [vmem:[#allocation7] sm:$0xf] %vm143_vm2, %v343_v15  ;;  %v207_v21 = vadd.f32 %v333_v9, %v206_v20 }
  0xed   :  { %v363_v22 = vpop.f32.mrf.mxu0  ;;  %219 = vst.msk [vmem:[#allocation8] sm:$0xf] %vm218_vm3, %v345_v17  ;;  %v371_v25 = vpop.f32.mrf.mxu1 }
  0xee   :  { %v344_v24 = vpack.c.bf16 %v132_v19, %v132_v19  ;;  %v346_v26 = vpack.c.bf16 %v207_v21, %v207_v21 }
  0xef   :  { %v278_v27 = vpop.f32.mrf.mxu0 }
  0xf0   :  { %v279_v28 = vadd.f32 %v339_v23, %v278_v27  ;;  %145 = vst.msk [vmem:[#allocation7 + $0x4] sm:$0xf] %vm143_vm2, %v344_v24 }
  0xf1   :  { %v378_v29 = vpop.f32.mrf.mxu0 }
  0xf2   :  { %446 = shalt.err (!%p443_p0)
}
  0xf3   :  { %299 = dma.vmem_to_hbm [thread:$0]  %s294_s30, 128, %s608_s7, [#allocation4], %s484_s12, %s484_s12, %s485_s13   ;;  %220 = vst.msk [vmem:[#allocation8 + $0x4] sm:$0xf] %vm218_vm3, %v346_v26 }
  0xf4   :  { %286 = vst.msk [vmem:[%s610_s9] sm:$0xff] %vm285_vm4, %v279_v28  ;;  %s455_s18 = scalar_lea.vmem %s306_s10, 128  ;;  %p460_p2 = scmp.lt.s32.totalorder %s306_s10, %s306_s10 }
  0xf5   :  { %p456_p1 = scmp.ne.s32.totalorder %s306_s10, %s455_s18  ;;  %p461_p3 = scmp.lt.s32.totalorder %s455_s18, %s455_s18 }
  0xf7   :  { %p462_p4 = por %p461_p3, %p460_p2 }
  0xf9   :  { %p463_p5 = pnand %p462_p4, %p456_p1 }
  0xfb   :  { %466 = shalt.err (!%p463_p5)
}
  0xfc   :  { %311 = dma.vmem_to_hbm [thread:$0]  %s306_s10, 128, %s609_s8, [#allocation9], %s484_s12, %s484_s12, %s485_s13   ;;  %v281_v30 = vpop.f32.mrf.mxu0 }
  0xfd   :  { %v282_v31 = vadd.f32 %v339_v23, %v281_v30 }
  0xfe   :  { %v379_v32 = vpop.f32.mrf.mxu0 }
  0xff   :  { %287 = vst.msk [vmem:[%s610_s9 + $0x8] sm:$0xff] %vm285_vm4, %v282_v31 }
 0x100   :  { %479 = dma.done.wait [#allocation4], 128  }
 0x101   :  { %480 = vsyncadd [#allocation4], 4294967168 }
 0x102   :  { %481 = dma.done.wait [#allocation9], 128  }
 0x103   :  { %482 = vsyncadd [#allocation9], 4294967168 }
 0x104   :  { %322 = vsyncpa [#allocation3], 1 }
 0x105   :  { %323 = vsyncpa [#allocation6], 1 }
 0x106   :  { %324 = vsyncpa [#allocation4], 1 }
 0x107   :  { %325 = vsyncpa [#allocation9], 1 }

</bundles_post_ra>
